<compile_context>
chip_gen: v6e
topology: v6e:2x2x1
jax: 0.10.0
libtpu: 0.0.40
codegen_flags: <defaults>
</compile_context>

<pallas_src>
import functools

import jax
import jax.numpy as jnp
from jax.experimental import pallas as pl
from jax.experimental.pallas import tpu as pltpu


# Per-branch output shift (dh, dw) implied by the PyTorch pads + final crop:
#   out[h, w] += y_k[h - dh, w - dw]   (zero when the source is off-image)
_SHIFTS = (
    (0, 0),    # pad [1, 1, 1, 1]
    (1, 1),    # pad [2, 0, 2, 0]
    (-1, 1),   # pad [2, 0, 0, 2]
    (1, -1),   # pad [0, 2, 2, 0]
    (1, 0),    # pad [1, 1, 2, 0]
)


def _sdc_kernel(x_ref, wf_ref, mask_ref, bias_ref, o_ref, *, W, CP, Cout):
    # x_ref:    (NB, Cin, M)        activations, stream dtype, M = H*W (lanes)
    # wf_ref:   (5*CP, Cin)         fused weight stack (branch k in rows k*CP:k*CP+Cout)
    # mask_ref: (5, CP, M)  f32     border-validity masks (branch 0 unused)
    # bias_ref: (CP, M)     f32     sum_k b_k * mask_k (rows >= Cout are zero)
    # o_ref:    (NB, Cout, M)
    NB = x_ref.shape[0]
    M = x_ref.shape[2]

    wf = wf_ref[...]        # resident weights (loaded once per grid step)
    bias0 = bias_ref[...]   # resident bias map

    for n in range(NB):
        x = x_ref[n]                                                   # (Cin, M)
        # One fused MXU dot for all 5 branches, f32 accumulation.
        y_all = jnp.dot(wf, x, preferred_element_type=jnp.float32)    # (5*CP, M)
        acc = bias0
        for k, (dh, dw) in enumerate(_SHIFTS):
            yk = y_all[k * CP:(k + 1) * CP]        # sublane-aligned 8-row slice
            if (dh, dw) != (0, 0):
                # Shift by (dh, dw) == roll by dh*W + dw on the flattened axis
                # (XLU), then a single multiply by the precomputed border mask
                # (kills both the off-image region and the roll wrap-around).
                yk = pltpu.roll(yk, shift=(dh * W + dw) % M, axis=1)
                yk = yk * mask_ref[k]
            acc = acc + yk
        o_ref[n] = acc[:Cout].astype(o_ref.dtype)


def _pick_batch_block(N, per_img_bytes, *, target=1 << 20, cap_bytes=4 << 20,
                      cap_nb=32):
    """Largest divisor NB of N (<= cap_nb) whose step traffic fits cap_bytes,
    preferring the first NB that reaches ~`target` bytes per grid step."""
    best = 1
    for d in range(1, min(N, cap_nb) + 1):
        if N % d:
            continue
        if d * per_img_bytes > cap_bytes:
            break
        best = d
        if d * per_img_bytes >= target:
            break
    return best


def sdc_conv2d_1x1s_3_ang1(x_nchw, weights, biases, *,
                           stream_dtype=jnp.bfloat16, out_dtype=None):
    """x_nchw: (N, Cin, H, W); weights: 5 x (Cout, Cin); biases: 5 x (Cout,).

    stream_dtype: dtype used to stream activations/weights (default bf16 on
    all generations; pass None to stream in x's dtype).  Accumulation is f32.
    out_dtype: output dtype (default: x's dtype).
    """
    N, Cin, H, W = x_nchw.shape
    Cout = weights[0].shape[0]
    M = H * W
    nbr = len(_SHIFTS)
    CP = -(-Cout // 8) * 8                       # branch rows padded to 8 sublanes
    out_dtype = x_nchw.dtype if out_dtype is None else out_dtype
    stream_dtype = x_nchw.dtype if stream_dtype is None else stream_dtype

    # Native-layout activations: zero-copy reshape of NCHW, no transposes.
    x = x_nchw.reshape(N, Cin, M).astype(stream_dtype)

    # Fused, zero-padded weight stack: branch k occupies rows [k*CP, k*CP+Cout).
    wf = jnp.zeros((nbr * CP, Cin), jnp.float32)
    for k, wk in enumerate(weights):
        wf = wf.at[k * CP:k * CP + Cout, :].set(wk.astype(jnp.float32))
    wf = wf.astype(stream_dtype)

    # Precomputed border masks and total bias map (both f32, resident).
    hh = jnp.arange(H, dtype=jnp.int32)[:, None]
    ww = jnp.arange(W, dtype=jnp.int32)[None, :]
    masks = []
    bias_map = jnp.zeros((CP, M), jnp.float32)
    for k, (dh, dw) in enumerate(_SHIFTS):
        valid = ((hh >= max(dh, 0)) & (hh < H + min(dh, 0)) &
                 (ww >= max(dw, 0)) & (ww < W + min(dw, 0)))
        m = valid.reshape(1, M).astype(jnp.float32)               # (1, M)
        masks.append(jnp.broadcast_to(m, (CP, M)))
        bk = jnp.zeros((CP,), jnp.float32).at[:Cout].set(
            biases[k].astype(jnp.float32))
        bias_map = bias_map + bk[:, None] * m
    masks = jnp.stack(masks)                                       # (5, CP, M)

    # Batch-block the grid so each step streams a reasonably sized tile.
    in_b = jnp.dtype(stream_dtype).itemsize
    out_b = jnp.dtype(out_dtype).itemsize
    per_img = M * (Cin * in_b + Cout * out_b)
    NB = _pick_batch_block(N, per_img)
    grid = (N // NB,)

    cost = pl.CostEstimate(
        flops=2 * N * nbr * CP * Cin * M,
        transcendentals=0,
        bytes_accessed=(N * Cin * M * in_b
                        + int(wf.size) * in_b
                        + int(masks.size) * 4
                        + int(bias_map.size) * 4
                        + N * Cout * M * out_b),
    )

    out = pl.pallas_call(
        functools.partial(_sdc_kernel, W=W, CP=CP, Cout=Cout),
        out_shape=jax.ShapeDtypeStruct((N, Cout, M), out_dtype),
        grid_spec=pl.GridSpec(
            grid=grid,
            in_specs=[
                pl.BlockSpec((NB, Cin, M), lambda i: (i, 0, 0)),
                pl.BlockSpec((nbr * CP, Cin), lambda i: (0, 0)),
                pl.BlockSpec((nbr, CP, M), lambda i: (0, 0, 0)),
                pl.BlockSpec((CP, M), lambda i: (0, 0)),
            ],
            out_specs=pl.BlockSpec((NB, Cout, M), lambda i: (i, 0, 0)),
        ),
        compiler_params=pltpu.CompilerParams(
            dimension_semantics=("parallel",),
            vmem_limit_bytes=48 * 1024 * 1024,
        ),
        cost_estimate=cost,
    )(x, wf, masks, bias_map)

    return out.reshape(N, Cout, H, W)                               # NCHW


def _reference(x_nchw, weights, biases):
    """Pure-JAX mirror of the PyTorch forward (5x conv1x1 + pad + sum + crop)."""
    pads = (
        (1, 1, 1, 1),
        (2, 0, 2, 0),
        (2, 0, 0, 2),
        (0, 2, 2, 0),
        (1, 1, 2, 0),
    )  # (left, right, top, bottom)
    acc = None
    for (w, b), (l, r, t, bo) in zip(zip(weights, biases), pads):
        y = jnp.einsum("nchw,oc->nohw", x_nchw, w) + b[None, :, None, None]
        y = jnp.pad(y, ((0, 0), (0, 0), (t, bo), (l, r)))
        acc = y if acc is None else acc + y
    return acc[:, :, 1:-1, 1:-1]


if __name__ == "__main__":
    key = jax.random.PRNGKey(0)
    N, Cin, Cout, H, W = 2, 4, 4, 16, 16

    keys = jax.random.split(key, 11)
    x = jax.random.normal(keys[0], (N, Cin, H, W), dtype=jnp.float32)
    weights = [0.1 * jax.random.normal(keys[1 + i], (Cout, Cin), dtype=jnp.float32)
               for i in range(5)]
    biases = [0.1 * jax.random.normal(keys[6 + i], (Cout,), dtype=jnp.float32)
              for i in range(5)]

    ref = _reference(x, weights, biases)

    # Default path: bf16 streaming, f32 accumulation, f32 output.
    out = jax.block_until_ready(sdc_conv2d_1x1s_3_ang1(x, weights, biases))
    assert out.shape == (N, Cout, H, W)
    assert jnp.allclose(out, ref, atol=5e-2, rtol=5e-2), float(
        jnp.max(jnp.abs(out - ref)))

    # Full-precision streaming path (exactness check).
    out_f32 = jax.block_until_ready(
        sdc_conv2d_1x1s_3_ang1(x, weights, biases, stream_dtype=None))
    assert jnp.allclose(out_f32, ref, atol=1e-4, rtol=1e-4), float(
        jnp.max(jnp.abs(out_f32 - ref)))

    print("KERNEL_OK")
</pallas_src>

<mosaic_0001>
module attributes {stable_mosaic.version = 11 : i64} {
  func.func @_sdc_kernel(%arg0: i32, %arg1: memref<2x4x256xbf16, #tpu.memory_space<vmem>>, %arg2: memref<40x4xbf16, #tpu.memory_space<vmem>>, %arg3: memref<5x8x256xf32, #tpu.memory_space<vmem>>, %arg4: memref<8x256xf32, #tpu.memory_space<vmem>>, %arg5: memref<2x4x256xf32, #tpu.memory_space<vmem>>) attributes {dimension_semantics = [#tpu.dimension_semantics<parallel>], iteration_bounds = array<i64: 1>, scalar_prefetch = 0 : i64, scratch_operands = 0 : i64, tpu.core_type = #tpu.core_type<tc>, window_params = [{transform_indices = @transform_0, window_bounds = array<i64: 2, 4, 256>}, {pipeline_mode = #tpu.pipeline_mode<synchronous>, transform_indices = @transform_1, window_bounds = array<i64: 40, 4>}, {pipeline_mode = #tpu.pipeline_mode<synchronous>, transform_indices = @transform_2, window_bounds = array<i64: 5, 8, 256>}, {pipeline_mode = #tpu.pipeline_mode<synchronous>, transform_indices = @transform_3, window_bounds = array<i64: 8, 256>}, {transform_indices = @transform_4, window_bounds = array<i64: 2, 4, 256>}]} {
    %c0 = arith.constant 0 : index
    %c0_0 = arith.constant 0 : index
    %0 = vector.load %arg2[%c0, %c0_0] : memref<40x4xbf16, #tpu.memory_space<vmem>>, vector<40x4xbf16>
    %c0_1 = arith.constant 0 : index
    %c0_2 = arith.constant 0 : index
    %1 = vector.load %arg4[%c0_1, %c0_2] : memref<8x256xf32, #tpu.memory_space<vmem>>, vector<8x256xf32>
    %c0_3 = arith.constant 0 : index
    %c0_4 = arith.constant 0 : index
    %c0_5 = arith.constant 0 : index
    %2 = vector.load %arg1[%c0_3, %c0_4, %c0_5] : memref<2x4x256xbf16, #tpu.memory_space<vmem>>, vector<1x4x256xbf16>
    %3 = vector.shape_cast %2 : vector<1x4x256xbf16> to vector<4x256xbf16>
    %cst = arith.constant dense<0.000000e+00> : vector<40x256xf32>
    %4 = tpu.matmul %0, %3, %cst {dimension_numbers = #tpu.dot_dimension_numbers<[1], [0], [0], [1], [0, 0, 1, 1], [], []>} : vector<40x4xbf16>, vector<4x256xbf16>, vector<40x256xf32> -> vector<40x256xf32>
    %5 = vector.extract_strided_slice %4 {offsets = [0, 0], sizes = [8, 256], strides = [1, 1]} : vector<40x256xf32> to vector<8x256xf32>
    %6 = arith.addf %1, %5 : vector<8x256xf32>
    %7 = vector.extract_strided_slice %4 {offsets = [8, 0], sizes = [8, 256], strides = [1, 1]} : vector<40x256xf32> to vector<8x256xf32>
    %c17_i32 = arith.constant 17 : i32
    %8 = tpu.dynamic_rotate %7 by %c17_i32 dim 1 : vector<8x256xf32>, i32 -> vector<8x256xf32>
    %c1 = arith.constant 1 : index
    %c0_6 = arith.constant 0 : index
    %c0_7 = arith.constant 0 : index
    %9 = vector.load %arg3[%c1, %c0_6, %c0_7] : memref<5x8x256xf32, #tpu.memory_space<vmem>>, vector<1x8x256xf32>
    %10 = vector.shape_cast %9 : vector<1x8x256xf32> to vector<8x256xf32>
    %11 = arith.mulf %8, %10 : vector<8x256xf32>
    %12 = arith.addf %6, %11 : vector<8x256xf32>
    %13 = vector.extract_strided_slice %4 {offsets = [16, 0], sizes = [8, 256], strides = [1, 1]} : vector<40x256xf32> to vector<8x256xf32>
    %c241_i32 = arith.constant 241 : i32
    %14 = tpu.dynamic_rotate %13 by %c241_i32 dim 1 : vector<8x256xf32>, i32 -> vector<8x256xf32>
    %c2 = arith.constant 2 : index
    %c0_8 = arith.constant 0 : index
    %c0_9 = arith.constant 0 : index
    %15 = vector.load %arg3[%c2, %c0_8, %c0_9] : memref<5x8x256xf32, #tpu.memory_space<vmem>>, vector<1x8x256xf32>
    %16 = vector.shape_cast %15 : vector<1x8x256xf32> to vector<8x256xf32>
    %17 = arith.mulf %14, %16 : vector<8x256xf32>
    %18 = arith.addf %12, %17 : vector<8x256xf32>
    %19 = vector.extract_strided_slice %4 {offsets = [24, 0], sizes = [8, 256], strides = [1, 1]} : vector<40x256xf32> to vector<8x256xf32>
    %c15_i32 = arith.constant 15 : i32
    %20 = tpu.dynamic_rotate %19 by %c15_i32 dim 1 : vector<8x256xf32>, i32 -> vector<8x256xf32>
    %c3 = arith.constant 3 : index
    %c0_10 = arith.constant 0 : index
    %c0_11 = arith.constant 0 : index
    %21 = vector.load %arg3[%c3, %c0_10, %c0_11] : memref<5x8x256xf32, #tpu.memory_space<vmem>>, vector<1x8x256xf32>
    %22 = vector.shape_cast %21 : vector<1x8x256xf32> to vector<8x256xf32>
    %23 = arith.mulf %20, %22 : vector<8x256xf32>
    %24 = arith.addf %18, %23 : vector<8x256xf32>
    %25 = vector.extract_strided_slice %4 {offsets = [32, 0], sizes = [8, 256], strides = [1, 1]} : vector<40x256xf32> to vector<8x256xf32>
    %c16_i32 = arith.constant 16 : i32
    %26 = tpu.dynamic_rotate %25 by %c16_i32 dim 1 : vector<8x256xf32>, i32 -> vector<8x256xf32>
    %c4 = arith.constant 4 : index
    %c0_12 = arith.constant 0 : index
    %c0_13 = arith.constant 0 : index
    %27 = vector.load %arg3[%c4, %c0_12, %c0_13] : memref<5x8x256xf32, #tpu.memory_space<vmem>>, vector<1x8x256xf32>
    %28 = vector.shape_cast %27 : vector<1x8x256xf32> to vector<8x256xf32>
    %29 = arith.mulf %26, %28 : vector<8x256xf32>
    %30 = arith.addf %24, %29 : vector<8x256xf32>
    %31 = vector.extract_strided_slice %30 {offsets = [0, 0], sizes = [4, 256], strides = [1, 1]} : vector<8x256xf32> to vector<4x256xf32>
    %c0_14 = arith.constant 0 : index
    %c0_15 = arith.constant 0 : index
    %c0_16 = arith.constant 0 : index
    %32 = vector.load %arg5[%c0_14, %c0_15, %c0_16] : memref<2x4x256xf32, #tpu.memory_space<vmem>>, vector<1x4x256xf32>
    %33 = vector.shape_cast %32 : vector<1x4x256xf32> to vector<4x256xf32>
    %34 = vector.shape_cast %31 : vector<4x256xf32> to vector<1x4x256xf32>
    tpu.vector_store %arg5[%c0_14, %c0_15, %c0_16], %34 {strides = array<i32>} : memref<2x4x256xf32, #tpu.memory_space<vmem>>, vector<1x4x256xf32>,
    %c1_17 = arith.constant 1 : index
    %c0_18 = arith.constant 0 : index
    %c0_19 = arith.constant 0 : index
    %35 = vector.load %arg1[%c1_17, %c0_18, %c0_19] : memref<2x4x256xbf16, #tpu.memory_space<vmem>>, vector<1x4x256xbf16>
    %36 = vector.shape_cast %35 : vector<1x4x256xbf16> to vector<4x256xbf16>
    %cst_20 = arith.constant dense<0.000000e+00> : vector<40x256xf32>
    %37 = tpu.matmul %0, %36, %cst_20 {dimension_numbers = #tpu.dot_dimension_numbers<[1], [0], [0], [1], [0, 0, 1, 1], [], []>} : vector<40x4xbf16>, vector<4x256xbf16>, vector<40x256xf32> -> vector<40x256xf32>
    %38 = vector.extract_strided_slice %37 {offsets = [0, 0], sizes = [8, 256], strides = [1, 1]} : vector<40x256xf32> to vector<8x256xf32>
    %39 = arith.addf %1, %38 : vector<8x256xf32>
    %40 = vector.extract_strided_slice %37 {offsets = [8, 0], sizes = [8, 256], strides = [1, 1]} : vector<40x256xf32> to vector<8x256xf32>
    %c17_i32_21 = arith.constant 17 : i32
    %41 = tpu.dynamic_rotate %40 by %c17_i32_21 dim 1 : vector<8x256xf32>, i32 -> vector<8x256xf32>
    %c1_22 = arith.constant 1 : index
    %c0_23 = arith.constant 0 : index
    %c0_24 = arith.constant 0 : index
    %42 = vector.load %arg3[%c1_22, %c0_23, %c0_24] : memref<5x8x256xf32, #tpu.memory_space<vmem>>, vector<1x8x256xf32>
    %43 = vector.shape_cast %42 : vector<1x8x256xf32> to vector<8x256xf32>
    %44 = arith.mulf %41, %43 : vector<8x256xf32>
    %45 = arith.addf %39, %44 : vector<8x256xf32>
    %46 = vector.extract_strided_slice %37 {offsets = [16, 0], sizes = [8, 256], strides = [1, 1]} : vector<40x256xf32> to vector<8x256xf32>
    %c241_i32_25 = arith.constant 241 : i32
    %47 = tpu.dynamic_rotate %46 by %c241_i32_25 dim 1 : vector<8x256xf32>, i32 -> vector<8x256xf32>
    %c2_26 = arith.constant 2 : index
    %c0_27 = arith.constant 0 : index
    %c0_28 = arith.constant 0 : index
    %48 = vector.load %arg3[%c2_26, %c0_27, %c0_28] : memref<5x8x256xf32, #tpu.memory_space<vmem>>, vector<1x8x256xf32>
    %49 = vector.shape_cast %48 : vector<1x8x256xf32> to vector<8x256xf32>
    %50 = arith.mulf %47, %49 : vector<8x256xf32>
    %51 = arith.addf %45, %50 : vector<8x256xf32>
    %52 = vector.extract_strided_slice %37 {offsets = [24, 0], sizes = [8, 256], strides = [1, 1]} : vector<40x256xf32> to vector<8x256xf32>
    %c15_i32_29 = arith.constant 15 : i32
    %53 = tpu.dynamic_rotate %52 by %c15_i32_29 dim 1 : vector<8x256xf32>, i32 -> vector<8x256xf32>
    %c3_30 = arith.constant 3 : index
    %c0_31 = arith.constant 0 : index
    %c0_32 = arith.constant 0 : index
    %54 = vector.load %arg3[%c3_30, %c0_31, %c0_32] : memref<5x8x256xf32, #tpu.memory_space<vmem>>, vector<1x8x256xf32>
    %55 = vector.shape_cast %54 : vector<1x8x256xf32> to vector<8x256xf32>
    %56 = arith.mulf %53, %55 : vector<8x256xf32>
    %57 = arith.addf %51, %56 : vector<8x256xf32>
    %58 = vector.extract_strided_slice %37 {offsets = [32, 0], sizes = [8, 256], strides = [1, 1]} : vector<40x256xf32> to vector<8x256xf32>
    %c16_i32_33 = arith.constant 16 : i32
    %59 = tpu.dynamic_rotate %58 by %c16_i32_33 dim 1 : vector<8x256xf32>, i32 -> vector<8x256xf32>
    %c4_34 = arith.constant 4 : index
    %c0_35 = arith.constant 0 : index
    %c0_36 = arith.constant 0 : index
    %60 = vector.load %arg3[%c4_34, %c0_35, %c0_36] : memref<5x8x256xf32, #tpu.memory_space<vmem>>, vector<1x8x256xf32>
    %61 = vector.shape_cast %60 : vector<1x8x256xf32> to vector<8x256xf32>
    %62 = arith.mulf %59, %61 : vector<8x256xf32>
    %63 = arith.addf %57, %62 : vector<8x256xf32>
    %64 = vector.extract_strided_slice %63 {offsets = [0, 0], sizes = [4, 256], strides = [1, 1]} : vector<8x256xf32> to vector<4x256xf32>
    %c1_37 = arith.constant 1 : index
    %c0_38 = arith.constant 0 : index
    %c0_39 = arith.constant 0 : index
    %65 = vector.load %arg5[%c1_37, %c0_38, %c0_39] : memref<2x4x256xf32, #tpu.memory_space<vmem>>, vector<1x4x256xf32>
    %66 = vector.shape_cast %65 : vector<1x4x256xf32> to vector<4x256xf32>
    %67 = vector.shape_cast %64 : vector<4x256xf32> to vector<1x4x256xf32>
    tpu.vector_store %arg5[%c1_37, %c0_38, %c0_39], %67 {strides = array<i32>} : memref<2x4x256xf32, #tpu.memory_space<vmem>>, vector<1x4x256xf32>,
    return
  }
  func.func @transform_0(%arg0: i32) -> (i32, i32, i32) {
    %c0_i32 = arith.constant 0 : i32
    %c0_i32_0 = arith.constant 0 : i32
    %c0_i32_1 = arith.constant 0 : i32
    return %arg0, %c0_i32, %c0_i32_0 : i32, i32, i32
  }
  func.func @transform_1(%arg0: i32) -> (i32, i32) {
    %c0_i32 = arith.constant 0 : i32
    %c0_i32_0 = arith.constant 0 : i32
    %c0_i32_1 = arith.constant 0 : i32
    return %c0_i32, %c0_i32_0 : i32, i32
  }
  func.func @transform_2(%arg0: i32) -> (i32, i32, i32) {
    %c0_i32 = arith.constant 0 : i32
    %c0_i32_0 = arith.constant 0 : i32
    %c0_i32_1 = arith.constant 0 : i32
    %c0_i32_2 = arith.constant 0 : i32
    return %c0_i32, %c0_i32_0, %c0_i32_1 : i32, i32, i32
  }
  func.func @transform_3(%arg0: i32) -> (i32, i32) {
    %c0_i32 = arith.constant 0 : i32
    %c0_i32_0 = arith.constant 0 : i32
    %c0_i32_1 = arith.constant 0 : i32
    return %c0_i32, %c0_i32_0 : i32, i32
  }
  func.func @transform_4(%arg0: i32) -> (i32, i32, i32) {
    %c0_i32 = arith.constant 0 : i32
    %c0_i32_0 = arith.constant 0 : i32
    %c0_i32_1 = arith.constant 0 : i32
    return %arg0, %c0_i32, %c0_i32_0 : i32, i32, i32
  }
}

</mosaic_0001>

<bundles_post_ra>
// kernel: tpu_custom_call.1
= control target key start
LH: loop header
LB: loop body
LE: loop exit
PB: predicated region body
PF: predicated region fallthrough
CT: control target
= control target key end

     0   :  { %9 = vsyncpa [#allocation3], 0  ;;  %s545_s0 = inlined_call_operand.vmem [shape: bf16[2,4,256], index: 0, kind: input, shape index: {}]   ;;  %s546_s1 = inlined_call_operand.vmem [shape: bf16[40,4], index: 1, kind: input, shape index: {}]   ;;  %s547_s2 = inlined_call_operand.hbm [shape: f32[5,8,256], index: 2, kind: input, shape index: {}]   ;;  %s548_s3 = inlined_call_operand.vmem [shape: f32[8,256], index: 3, kind: input, shape index: {}]   ;;  %s549_s4 = inlined_call_operand.hbm [shape: f32[2,4,256], index: 4, kind: output, shape index: {}]  }
   0x1   :  { %10 = vsyncpa [#allocation4], 0  ;;  %s428_s15 = smov [#allocation2]  }
   0x2   :  { %s20_s16 = sshll.u32 %s428_s15, 4  ;;  %s21_s16 = int_to_ptr.vmem [resolvable:$true] %s20_s16 }
   0x3   :  { %s392_s17 = scalar_lea.vmem %s21_s16, 1280  ;;  %p397_p1 = scmp.lt.s32.totalorder %s21_s16, %s21_s16 }
   0x4   :  { %p393_p0 = scmp.ne.s32.totalorder %s21_s16, %s392_s17  ;;  %p398_p2 = scmp.lt.s32.totalorder %s392_s17, %s392_s17 }
   0x6   :  { %p399_p3 = por %p398_p2, %p397_p1 }
   0x8   :  { %p400_p4 = pnand %p399_p3, %p393_p0 }
   0xa   :  { %403 = shalt.err (!%p400_p4)
}
   0xb   :  { %s429_s18 = smov 256   ;;  %s430_s19 = smov 16  }
   0xc   :  { %26 = dma.hbm_to_vmem [thread:$0]  %s547_s2, 1280, %s21_s16, [#allocation3], %s429_s18, %s429_s18, %s430_s19  }
   0xd   :  { %424 = dma.done.wait [#allocation3], 1280  }
   0xe   :  { %425 = vsyncadd [#allocation3], 4294966016  ;;  %v431_v0 = vmov 0   ;;  %vm73_vm0 = vcmask 1041408   ;;  %v381_v7 = vld [vmem:[%s546_s1] sm:$0xff]   ;;  %vm63_vm1 = vcmask 31744   ;;  %v147_v36 = vlaneseq }
   0xf   :  { %112 = vmatprep.mubr.bf16.mxu0 %v431_v0  ;;  %255 = vmatprep.mubr.bf16.mxu1 %v431_v0  ;;  %v360_v1 = vld.sshfl [vmem:[%s545_s0] sm:$0x33 pattern:$0x76325410]  ;;  %v382_v8 = vld [vmem:[%s546_s1 + $0x8] sm:$0xff]   ;;  %s432_s30 = smov 17  }
  0x10   :  { %v62_v2 = vcombine.high %v360_v1, %v360_v1  ;;  %v366_v3 = vld.sshfl [vmem:[%s545_s0 + $0x4] sm:$0x33 pattern:$0x76325410]  ;;  %v75_v4 = vsel %vm73_vm0, %v360_v1, 0  ;;  %s434_s5 = smov 15  }
  0x11   :  { %v216_v5 = vcombine.high %v366_v3, %v366_v3  ;;  %v218_v6 = vsel %vm73_vm0, %v366_v3, 0  ;;  %v383_v9 = vld [vmem:[%s546_s1 + $0x10] ss:$0 sps:$4 sm:$0xff]   ;;  %s433_s1 = smov 113   ;;  %v494_v39 = vand.u32 127, %v147_v36  ;;  %v38_v46 = vld [vmem:[%s548_s3] sm:$0xff] }
  0x12   :  { %361 = vmatprep.subr.msk.bf16.mxu0 %vm73_vm0, %v62_v2  ;;  %v292_v44 = vld [vmem:[#allocation2 + $0x10] sm:$0xff]  ;;  %v293_v47 = vld [vmem:[#allocation2 + $0x18] sm:$0xff]  ;;  %v39_v50 = vld [vmem:[%s548_s3 + $0x8] sm:$0xff]  ;;  %s435_s3 = smov [#allocation5]  }
  0x13   :  { %367 = vmatprep.subr.msk.bf16.mxu1 %vm73_vm0, %v216_v5  ;;  %95 = vmatpush1.bf16.msra.mxu0 %v75_v4  ;;  %vm149_vm2 = vcmp.lt.s32.totalorder %v494_v39, 17  ;;  %vm163_vm3 = vcmp.lt.s32.totalorder %v494_v39, 113  ;;  %vm177_vm4 = vcmp.lt.s32.totalorder %v494_v39, 15  ;;  %v167_v51 = vld [vmem:[#allocation2 + $0x20] sm:$0xff]  ;;  %v168_v57 = vld [vmem:[#allocation2 + $0x28] sm:$0xff]  ;;  %v181_v61 = vld [vmem:[#allocation2 + $0x30] sm:$0xff] }
  0x14   :  { %238 = vmatpush1.bf16.msra.mxu1 %v218_v6  ;;  %v182_v2 = vld [vmem:[#allocation2 + $0x38] sm:$0xff]  ;;  %vm191_vm5 = vcmp.lt.s32.totalorder %v494_v39, 16  ;;  %s345_s10 = sshll.u32 %s435_s3, 4  ;;  %s346_s10 = int_to_ptr.vmem [resolvable:$true] %s345_s10 }
  0x15   :  { %s404_s11 = scalar_lea.vmem %s346_s10, 256  ;;  %p409_p6 = scmp.lt.s32.totalorder %s346_s10, %s346_s10 }
  0x16   :  { %362 = vmatmul.mubr.msk.bf16.vlgmr.msra.gmra.mxu0 %vm63_vm1, %v381_v7  ;;  %p405_p5 = scmp.ne.s32.totalorder %s346_s10, %s404_s11  ;;  %p410_p7 = scmp.lt.s32.totalorder %s404_s11, %s404_s11 }
  0x17   :  { %368 = vmatmul.mubr.msk.bf16.vlgmr.msra.gmra.mxu1 %vm63_vm1, %v381_v7  ;;  %122 = vmatprep.mubr.bf16.mxu0 %v431_v0 }
  0x18   :  { %265 = vmatprep.mubr.bf16.mxu1 %v431_v0  ;;  %p411_p8 = por %p410_p7, %p409_p6 }
  0x1a   :  { %p412_p9 = pnand %p411_p8, %p405_p5 }
  0x1e   :  { %363 = vmatmul.mubr.msk.bf16.gmra.mxu0 %vm63_vm1, %v382_v8 }
  0x1f   :  { %369 = vmatmul.mubr.msk.bf16.gmra.mxu1 %vm63_vm1, %v382_v8  ;;  %132 = vmatprep.mubr.bf16.mxu0 %v431_v0 }
  0x20   :  { %275 = vmatprep.mubr.bf16.mxu1 %v431_v0 }
  0x26   :  { %364 = vmatmul.mubr.msk.bf16.gmra.mxu0 %vm63_vm1, %v383_v9 }
  0x27   :  { %370 = vmatmul.mubr.msk.bf16.gmra.mxu1 %vm63_vm1, %v383_v9 }
  0xd6   :  { %v482_v10 = vpop.f32.mrf.mxu0 }
  0xd7   :  { %v484_v11 = vpop.f32.mrf.mxu1  ;;  %v141_v59 = vadd.f32 %v482_v10, %v38_v46 }
  0xd8   :  { %v486_v12 = vpop.f32.mrf.mxu0  ;;  %v284_v63 = vadd.f32 %v484_v11, %v38_v46 }
  0xd9   :  { %v488_v13 = vpop.f32.mrf.mxu1  ;;  %v142_v0 = vadd.f32 %v486_v12, %v39_v50 }
  0xda   :  { %v118_v14 = vpop.f32.mrf.mxu0  ;;  %v285_v10 = vadd.f32 %v488_v13, %v39_v50  ;;  %v196_v13 = vld [vmem:[#allocation2 + $0x48] sm:$0xff] }
  0xdb   :  { %v261_v15 = vpop.f32.mrf.mxu1  ;;  %143 = vrot.lane.b32.xlu0 %v118_v14, %s432_s30 }
  0xdc   :  { %286 = vrot.lane.b32.xlu1 %v261_v15, %s432_s30  ;;  %v120_v16 = vpop.f32.mrf.mxu0 }
  0xdd   :  { %v263_v17 = vpop.f32.mrf.mxu1 }
  0xde   :  { %v124_v18 = vpop.f32.mrf.mxu0 }
  0xdf   :  { %v267_v19 = vpop.f32.mrf.mxu1  ;;  %145 = vrot.lane.b32.xlu0 %v120_v16, %s432_s30 }
  0xe0   :  { %288 = vrot.lane.b32.xlu1 %v263_v17, %s432_s30  ;;  %v126_v20 = vpop.f32.mrf.mxu0 }
  0xe1   :  { %v269_v21 = vpop.f32.mrf.mxu1 }
  0xe2   :  { %v128_v22 = vpop.f32.mrf.mxu0 }
  0xe3   :  { %v271_v23 = vpop.f32.mrf.mxu1  ;;  %159 = vrot.lane.b32.xlu0 %v124_v18, %s433_s1 }
  0xe4   :  { %161 = vrot.lane.b32.xlu1 %v126_v20, %s433_s1  ;;  %v130_v24 = vpop.f32.mrf.mxu0 }
  0xe5   :  { %v273_v25 = vpop.f32.mrf.mxu1 }
  0xe6   :  { %v134_v26 = vpop.f32.mrf.mxu0 }
  0xe7   :  { %298 = vrot.lane.b32.xlu0 %v267_v19, %s433_s1  ;;  %v277_v27 = vpop.f32.mrf.mxu1 }
  0xe8   :  { %300 = vrot.lane.b32.xlu1 %v269_v21, %s433_s1  ;;  %v136_v28 = vpop.f32.mrf.mxu0 }
  0xe9   :  { %v279_v29 = vpop.f32.mrf.mxu1 }
  0xea   :  { %v138_v30 = vpop.f32.mrf.mxu0 }
  0xeb   :  { %173 = vrot.lane.b32.xlu0 %v128_v22, %s434_s5  ;;  %v281_v31 = vpop.f32.mrf.mxu1  ;;  %v195_v22 = vld [vmem:[#allocation2 + $0x40] sm:$0xff] }
  0xec   :  { %175 = vrot.lane.b32.xlu1 %v130_v24, %s434_s5  ;;  %v139_v32 = vpop.f32.mrf.mxu0 }
  0xed   :  { %v282_v33 = vpop.f32.mrf.mxu1 }
  0xef   :  { %310 = vrot.lane.b32.xlu0 %v271_v23, %s434_s5 }
  0xf0   :  { %312 = vrot.lane.b32.xlu1 %v273_v25, %s434_s5 }
  0xf3   :  { %187 = vrot.lane.b32.xlu0 %v134_v26, %s430_s19 }
  0xf4   :  { %189 = vrot.lane.b32.xlu1 %v136_v28, %s430_s19 }
  0xf7   :  { %322 = vrot.lane.b32.xlu0 %v277_v27, %s430_s19 }
  0xf8   :  { %324 = vrot.lane.b32.xlu1 %v279_v29, %s430_s19 }
 0x14d   :  { %v144_v34 = vpop.permute.xlu0 %143 }
 0x14e   :  { %v287_v35 = vpop.permute.xlu1 %286 }
 0x151   :  { %v146_v37 = vpop.permute.xlu0 %145 }
 0x152   :  { %v289_v38 = vpop.permute.xlu1 %288  ;;  %v151_v45 = vsel %vm149_vm2, %v146_v37, %v144_v34  ;;  %v150_v48 = vsel %vm149_vm2, %v144_v34, %v146_v37 }
 0x153   :  { %v290_v54 = vsel %vm149_vm2, %v287_v35, %v289_v38  ;;  %v291_v55 = vsel %vm149_vm2, %v289_v38, %v287_v35  ;;  %v155_v56 = vmul.f32 %v292_v44, %v151_v45  ;;  %v156_v60 = vmul.f32 %v293_v47, %v150_v48 }
 0x154   :  { %v294_v5 = vmul.f32 %v292_v44, %v291_v55  ;;  %v295_v6 = vmul.f32 %v293_v47, %v290_v54 }
 0x155   :  { %v160_v40 = vpop.permute.xlu0 %159  ;;  %v157_v14 = vadd.f32 %v155_v56, %v141_v59  ;;  %v158_v15 = vadd.f32 %v156_v60, %v142_v0 }
 0x156   :  { %v162_v41 = vpop.permute.xlu1 %161  ;;  %v296_v23 = vadd.f32 %v294_v5, %v284_v63  ;;  %v297_v24 = vadd.f32 %v295_v6, %v285_v10 }
 0x157   :  { %v164_v52 = vsel %vm163_vm3, %v160_v40, %v162_v41  ;;  %v165_v58 = vsel %vm163_vm3, %v162_v41, %v160_v40 }
 0x158   :  { %v169_v1 = vmul.f32 %v167_v51, %v164_v52  ;;  %v170_v7 = vmul.f32 %v168_v57, %v165_v58 }
 0x159   :  { %v299_v42 = vpop.permute.xlu0 %298 }
 0x15a   :  { %v301_v43 = vpop.permute.xlu1 %300  ;;  %v171_v18 = vadd.f32 %v169_v1, %v157_v14  ;;  %v172_v25 = vadd.f32 %v170_v7, %v158_v15 }
 0x15b   :  { %v302_v8 = vsel %vm163_vm3, %v299_v42, %v301_v43  ;;  %v303_v11 = vsel %vm163_vm3, %v301_v43, %v299_v42 }
 0x15c   :  { %v306_v19 = vmul.f32 %v302_v8, %v167_v51  ;;  %v307_v26 = vmul.f32 %v303_v11, %v168_v57 }
 0x15d   :  { %v174_v49 = vpop.permute.xlu0 %173 }
 0x15e   :  { %v176_v53 = vpop.permute.xlu1 %175  ;;  %v308_v36 = vadd.f32 %v306_v19, %v296_v23  ;;  %v309_v38 = vadd.f32 %v307_v26, %v297_v24 }
 0x15f   :  { %v179_v62 = vsel %vm177_vm4, %v176_v53, %v174_v49  ;;  %v178_v3 = vsel %vm177_vm4, %v174_v49, %v176_v53 }
 0x160   :  { %v183_v12 = vmul.f32 %v181_v61, %v179_v62  ;;  %v184_v16 = vmul.f32 %v182_v2, %v178_v3 }
 0x161   :  { %v311_v4 = vpop.permute.xlu0 %310 }
 0x162   :  { %v313_v9 = vpop.permute.xlu1 %312  ;;  %v185_v28 = vadd.f32 %v183_v12, %v171_v18  ;;  %v186_v32 = vadd.f32 %v184_v16, %v172_v25 }
 0x163   :  { %v315_v17 = vsel %vm177_vm4, %v313_v9, %v311_v4  ;;  %v314_v20 = vsel %vm177_vm4, %v311_v4, %v313_v9 }
 0x164   :  { %v318_v29 = vmul.f32 %v315_v17, %v181_v61  ;;  %v319_v33 = vmul.f32 %v314_v20, %v182_v2 }
 0x165   :  { %v188_v21 = vpop.permute.xlu0 %187 }
 0x166   :  { %v190_v27 = vpop.permute.xlu1 %189  ;;  %v320_v43 = vadd.f32 %v318_v29, %v308_v36  ;;  %v321_v46 = vadd.f32 %v319_v33, %v309_v38 }
 0x167   :  { %v192_v30 = vsel %vm191_vm5, %v188_v21, %v190_v27  ;;  %v193_v31 = vsel %vm191_vm5, %v190_v27, %v188_v21 }
 0x168   :  { %v197_v34 = vmul.f32 %v195_v22, %v193_v31  ;;  %v198_v35 = vmul.f32 %v196_v13, %v192_v30 }
 0x169   :  { %v323_v37 = vpop.permute.xlu0 %322 }
 0x16a   :  { %v199_v40 = vadd.f32 %v197_v34, %v185_v28  ;;  %v200_v41 = vadd.f32 %v198_v35, %v186_v32  ;;  %v325_v42 = vpop.permute.xlu1 %324 }
 0x16b   :  { %v326_v44 = vsel %vm191_vm5, %v323_v37, %v325_v42  ;;  %v327_v45 = vsel %vm191_vm5, %v325_v42, %v323_v37 }
 0x16c   :  { %v203_v47 = vcombine.low %v199_v40, %v200_v41  ;;  %v330_v48 = vmul.f32 %v327_v45, %v195_v22  ;;  %v331_v49 = vmul.f32 %v326_v44, %v196_v13 }
 0x16e   :  { %205 = vst [vmem:[#allocation5] sm:$0xff] %v203_v47  ;;  %v332_v50 = vadd.f32 %v330_v48, %v320_v43  ;;  %v333_v51 = vadd.f32 %v331_v49, %v321_v46 }
 0x170   :  { %v336_v52 = vcombine.low %v332_v50, %v333_v51 }
 0x172   :  { %339 = vst [vmem:[#allocation5 + $0x8] sm:$0xff] %v336_v52 }
 0x173   :  { %415 = shalt.err (!%p412_p9)
}
 0x174   :  { %s436_s12 = smov 128   ;;  %s437_s13 = smov 8  }
 0x175   :  { %351 = dma.vmem_to_hbm [thread:$0]  %s346_s10, 256, %s549_s4, [#allocation4], %s436_s12, %s436_s12, %s437_s13  }
 0x176   :  { %426 = dma.done.wait [#allocation4], 256  }
 0x177   :  { %427 = vsyncadd [#allocation4], 4294967040 }
 0x178   :  { %355 = vsyncpa [#allocation3], 1 }
 0x179   :  { %356 = vsyncpa [#allocation4], 1 }

</bundles_post_ra>
